<compile_context>
chip_gen: v6e
topology: v6e:2x2x1
jax: 0.10.0
libtpu: 0.0.40
codegen_flags: <defaults>
</compile_context>

<pallas_src>
import jax
import jax.numpy as jnp
from jax.experimental import pallas as pl
from jax.experimental.pallas import tpu as pltpu

LANE = 128  # padded width of each gate group: lanes [0:H)=fwd, [H:2H)=bwd, rest zero


# ----------------------------- Pallas kernel -------------------------------
#
# Packed layouts (built once in pack_params):
#   embed_aug (vocab, E+1): row v = [emb[v] | 1.0]  (trailing 1 folds the gate biases)
#   w_gi  (E+1, 3*128): gate groups [r | z | n]; inside each group cols 0:H fwd, H:2H bwd;
#                       row E is the bias row (r/z = b_ih+b_hh, n = b_ih only)
#   w_hh  (128, 3*128): block-diagonal per direction, rows >= 2H zero
#   b_hn  (1, 128):     b_hh n-gate (must stay inside r*(...)), lanes >= 2H zero
#   w_head(128, 128):   w1^T @ w2^T (fct2∘fct1 fold), cols >= C zero, rows >= 2H zero
#   b_head(1, 128):     b1 @ w2^T + b2, lanes >= C zero

def bigru_kernel(ids_ref, emb_ref, wgi_ref, whh_ref, whd_ref, bhn_ref, bhd_ref, out_ref):
    L = ids_ref.shape[0]
    H = emb_ref.shape[1] - 1          # E == H; last table column is the constant 1.0
    G = LANE

    # ---- in-kernel embedding gather: L dynamic row reads from the VMEM table ----
    rows = [emb_ref[pl.ds(ids_ref[s], 1), :] for s in range(L)]
    x_aug = jnp.concatenate(rows, axis=0)                                      # (L, E+1)

    # ---- all input-gate projections (both directions) + biases: ONE MXU pass ----
    gi_all = jnp.dot(x_aug, wgi_ref[...], preferred_element_type=jnp.float32)  # (L, 3G)

    # Per-step fused gate rows: fwd lanes from token s, bwd lanes from token L-1-s.
    # Depends only on gi_all -> hoisted off the recurrence critical path.
    lane_in_group = jax.lax.broadcasted_iota(jnp.int32, (1, 3 * G), 1) % G
    fwd_lanes = lane_in_group < H
    gi_steps = [jnp.where(fwd_lanes, gi_all[s:s + 1, :], gi_all[L - 1 - s:L - s, :])
                for s in range(L)]

    w_hh = whh_ref[...]               # (G, 3G); rows >= 2H are zero
    b_hn = bhn_ref[...]               # (1, G)

    # ---- fused fwd+bwd recurrence; h = [h_f | h_b | 0-pad]; all slices 128-lane tiles ----
    # TODO(synk): for long sequences keep w_hh resident on the MXU
    # (pltpu.matmul_push_rhs / matmul_acc_lhs / matmul_pop) and move the recurrence into
    # lax.fori_loop; at L=2 the two unrolled steps below are already minimal.
    h = jnp.zeros((1, G), jnp.float32)
    for s in range(L):                                    # tiny static trip count
        gi = gi_steps[s]
        if s == 0:                    # h == 0 => gh == 0: skip the hidden matmul
            r = jax.nn.sigmoid(gi[:, 0:G])
            z = jax.nn.sigmoid(gi[:, G:2 * G])
            hn = b_hn
        else:
            gh = jnp.dot(h, w_hh, preferred_element_type=jnp.float32)          # (1, 3G)
            r = jax.nn.sigmoid(gi[:, 0:G] + gh[:, 0:G])
            z = jax.nn.sigmoid(gi[:, G:2 * G] + gh[:, G:2 * G])
            hn = gh[:, 2 * G:3 * G] + b_hn
        n = jnp.tanh(gi[:, 2 * G:3 * G] + r * hn)
        h = (1.0 - z) * n + z * h     # padded lanes provably stay 0

    # ---- fused classifier head fct2(fct1(.)); lane-dense (1,128) store ----
    y = jnp.dot(h, whd_ref[...], preferred_element_type=jnp.float32)           # (1, G)
    out_ref[...] = y + bhd_ref[...]


# ------------------------------- packing / wrapper ---------------------------

def pack_params(p):
    """Build the packed, lane-aligned weight slabs (done once, outside the hot path)."""
    E = p["embed"].shape[1]
    H = E
    C = p["w2"].shape[0]
    G = LANE
    assert 2 * H <= G and C <= G

    def g3(w):  # split PyTorch gate-stacked (3H, ...) into r, z, n
        return w[0:H], w[H:2 * H], w[2 * H:3 * H]

    ri_f, zi_f, ni_f = g3(p["wih_f"]); ri_b, zi_b, ni_b = g3(p["wih_b"])
    rh_f, zh_f, nh_f = g3(p["whh_f"]); rh_b, zh_b, nh_b = g3(p["whh_b"])
    bir_f, biz_f, bin_f = g3(p["bih_f"]); bhr_f, bhz_f, bhn_f = g3(p["bhh_f"])
    bir_b, biz_b, bin_b = g3(p["bih_b"]); bhr_b, bhz_b, bhn_b = g3(p["bhh_b"])

    # embedding table + trailing ones column -> gate biases ride the gi matmul
    embed_aug = jnp.concatenate(
        [p["embed"].astype(jnp.float32),
         jnp.ones((p["embed"].shape[0], 1), jnp.float32)], axis=1)          # (vocab, E+1)

    # input projection (E+1, 3G); each gate group padded to a full 128-lane tile
    w_gi = jnp.zeros((E + 1, 3 * G), jnp.float32)
    w_gi = w_gi.at[0:E, 0 * G:0 * G + H].set(ri_f.T).at[0:E, 0 * G + H:0 * G + 2 * H].set(ri_b.T)
    w_gi = w_gi.at[0:E, 1 * G:1 * G + H].set(zi_f.T).at[0:E, 1 * G + H:1 * G + 2 * H].set(zi_b.T)
    w_gi = w_gi.at[0:E, 2 * G:2 * G + H].set(ni_f.T).at[0:E, 2 * G + H:2 * G + 2 * H].set(ni_b.T)
    # bias row: r/z = b_ih + b_hh pre-summed; n = b_ih only (b_hh_n stays inside r*(.))
    w_gi = w_gi.at[E, 0 * G:0 * G + H].set(bir_f + bhr_f).at[E, 0 * G + H:0 * G + 2 * H].set(bir_b + bhr_b)
    w_gi = w_gi.at[E, 1 * G:1 * G + H].set(biz_f + bhz_f).at[E, 1 * G + H:1 * G + 2 * H].set(biz_b + bhz_b)
    w_gi = w_gi.at[E, 2 * G:2 * G + H].set(bin_f).at[E, 2 * G + H:2 * G + 2 * H].set(bin_b)

    # hidden projection (G, 3G): block-diagonal per direction; rows >= 2H zero
    w_hh = jnp.zeros((G, 3 * G), jnp.float32)
    w_hh = w_hh.at[0:H, 0 * G:0 * G + H].set(rh_f.T).at[H:2 * H, 0 * G + H:0 * G + 2 * H].set(rh_b.T)
    w_hh = w_hh.at[0:H, 1 * G:1 * G + H].set(zh_f.T).at[H:2 * H, 1 * G + H:1 * G + 2 * H].set(zh_b.T)
    w_hh = w_hh.at[0:H, 2 * G:2 * G + H].set(nh_f.T).at[H:2 * H, 2 * G + H:2 * G + 2 * H].set(nh_b.T)

    b_hn = jnp.zeros((1, G), jnp.float32).at[0, 0:H].set(bhn_f).at[0, H:2 * H].set(bhn_b)

    # fct2(fct1(x)) has no intermediate nonlinearity -> fold into one (G, G) matmul
    w_head_s = jnp.dot(p["w1"].T, p["w2"].T, precision=jax.lax.Precision.HIGHEST)  # (2H, C)
    w_head = jnp.zeros((G, G), jnp.float32).at[0:2 * H, 0:C].set(w_head_s)
    b_head_s = jnp.dot(p["b1"], p["w2"].T, precision=jax.lax.Precision.HIGHEST) + p["b2"]
    b_head = jnp.zeros((1, G), jnp.float32).at[0, 0:C].set(b_head_s)

    return dict(embed_aug=embed_aug, w_gi=w_gi, w_hh=w_hh, w_head=w_head,
                b_hn=b_hn, b_head=b_head, C=C)


def bidirectional_gru_forward(ids, packed):
    """Single pallas_call: ids prefetched to SMEM, embedding gather done in-kernel."""
    C = packed["C"]

    def full2d(arr):
        return pl.BlockSpec(arr.shape, lambda i, ids_ref: (0, 0))

    grid_spec = pltpu.PrefetchScalarGridSpec(
        num_scalar_prefetch=1,
        grid=(1,),
        in_specs=[full2d(packed["embed_aug"]), full2d(packed["w_gi"]),
                  full2d(packed["w_hh"]), full2d(packed["w_head"]),
                  full2d(packed["b_hn"]), full2d(packed["b_head"])],
        out_specs=pl.BlockSpec((1, LANE), lambda i, ids_ref: (0, 0)),
    )
    y = pl.pallas_call(
        bigru_kernel,
        out_shape=jax.ShapeDtypeStruct((1, LANE), jnp.float32),
        grid_spec=grid_spec,
        compiler_params=pltpu.CompilerParams(dimension_semantics=("arbitrary",)),
    )(ids.astype(jnp.int32), packed["embed_aug"], packed["w_gi"], packed["w_hh"],
      packed["w_head"], packed["b_hn"], packed["b_head"])
    return y[:, 0:C]                      # lane-dense kernel output, sliced to C here


# --------------------------- params / reference -----------------------------

def init_params(key, vocab_size, E, context_size):
    H = E
    ks = jax.random.split(key, 13)
    kg = 1.0 / float(jnp.sqrt(float(H)))

    def u(kk, shape, bound):
        return jax.random.uniform(kk, shape, jnp.float32, -bound, bound)

    k1 = 1.0 / float(jnp.sqrt(float(E * context_size)))
    k2 = 1.0 / float(jnp.sqrt(12.0))
    return dict(
        embed=jax.random.normal(ks[0], (vocab_size, E), jnp.float32),
        wih_f=u(ks[1], (3 * H, E), kg), whh_f=u(ks[2], (3 * H, H), kg),
        bih_f=u(ks[3], (3 * H,), kg),   bhh_f=u(ks[4], (3 * H,), kg),
        wih_b=u(ks[5], (3 * H, E), kg), whh_b=u(ks[6], (3 * H, H), kg),
        bih_b=u(ks[7], (3 * H,), kg),   bhh_b=u(ks[8], (3 * H,), kg),
        w1=u(ks[9], (12, E * context_size), k1), b1=u(ks[10], (12,), k1),
        w2=u(ks[11], (context_size, 12), k2),    b2=u(ks[12], (context_size,), k2),
    )


def reference_forward(ids, p):
    """Pure-JAX mirror of the PyTorch forward (batch=1)."""
    H = p["embed"].shape[1]
    emb = p["embed"][ids]                               # (L, E)

    def cell(x_t, h, wih, whh, bih, bhh):
        gi = x_t @ wih.T + bih
        gh = h @ whh.T + bhh
        i_r, i_z, i_n = jnp.split(gi, 3)
        h_r, h_z, h_n = jnp.split(gh, 3)
        r = jax.nn.sigmoid(i_r + h_r)
        z = jax.nn.sigmoid(i_z + h_z)
        n = jnp.tanh(i_n + r * h_n)
        return (1.0 - z) * n + z * h

    L = emb.shape[0]
    h_f = jnp.zeros((H,), jnp.float32)
    for t in range(L):
        h_f = cell(emb[t], h_f, p["wih_f"], p["whh_f"], p["bih_f"], p["bhh_f"])
    h_b = jnp.zeros((H,), jnp.float32)
    for t in range(L - 1, -1, -1):
        h_b = cell(emb[t], h_b, p["wih_b"], p["whh_b"], p["bih_b"], p["bhh_b"])

    hcat = jnp.concatenate([h_f, h_b])                  # (2H,) == h_n.view(1,-1)
    y1 = hcat @ p["w1"].T + p["b1"]
    y2 = y1 @ p["w2"].T + p["b2"]
    return y2[None, :]                                  # (1, context_size)


# --------------------------------- main --------------------------------------

if __name__ == "__main__":
    vocab_size, embedding_size, context_size = 100, 32, 2

    key = jax.random.PRNGKey(0)
    kp, kx = jax.random.split(key)
    params = init_params(kp, vocab_size, embedding_size, context_size)
    packed = pack_params(params)
    x = jax.random.randint(kx, (context_size,), 0, vocab_size, dtype=jnp.int32)

    out = bidirectional_gru_forward(x, packed)
    out = jax.block_until_ready(out)

    ref = reference_forward(x, params)
    assert out.shape == (1, context_size), out.shape
    assert jnp.allclose(out, ref, atol=1e-4, rtol=1e-4), (out, ref)

    print("KERNEL_OK")
</pallas_src>

<mosaic_0001>
module attributes {stable_mosaic.version = 11 : i64} {
  func.func @bigru_kernel(%arg0: i32, %arg1: memref<2xi32, #tpu.memory_space<smem>>, %arg2: memref<100x33xf32, #tpu.memory_space<vmem>>, %arg3: memref<33x384xf32, #tpu.memory_space<vmem>>, %arg4: memref<128x384xf32, #tpu.memory_space<vmem>>, %arg5: memref<128x128xf32, #tpu.memory_space<vmem>>, %arg6: memref<1x128xf32, #tpu.memory_space<vmem>>, %arg7: memref<1x128xf32, #tpu.memory_space<vmem>>, %arg8: memref<1x128xf32, #tpu.memory_space<vmem>>) attributes {dimension_semantics = [#tpu.dimension_semantics<arbitrary>], iteration_bounds = array<i64: 1>, scalar_prefetch = 1 : i64, scratch_operands = 0 : i64, tpu.core_type = #tpu.core_type<tc>, window_params = [{pipeline_mode = #tpu.pipeline_mode<synchronous>, transform_indices = @transform_0, window_bounds = array<i64: 100, 33>}, {pipeline_mode = #tpu.pipeline_mode<synchronous>, transform_indices = @transform_1, window_bounds = array<i64: 33, 384>}, {pipeline_mode = #tpu.pipeline_mode<synchronous>, transform_indices = @transform_2, window_bounds = array<i64: 128, 384>}, {pipeline_mode = #tpu.pipeline_mode<synchronous>, transform_indices = @transform_3, window_bounds = array<i64: 128, 128>}, {pipeline_mode = #tpu.pipeline_mode<synchronous>, transform_indices = @transform_4, window_bounds = array<i64: 1, 128>}, {pipeline_mode = #tpu.pipeline_mode<synchronous>, transform_indices = @transform_5, window_bounds = array<i64: 1, 128>}, {pipeline_mode = #tpu.pipeline_mode<synchronous>, transform_indices = @transform_6, window_bounds = array<i64: 1, 128>}]} {
    %c0 = arith.constant 0 : index
    %0 = memref.load %arg1[%c0] : memref<2xi32, #tpu.memory_space<smem>>
    %1 = arith.index_cast %0 : i32 to index
    %c0_0 = arith.constant 0 : index
    %2 = vector.load %arg2[%1, %c0_0] : memref<100x33xf32, #tpu.memory_space<vmem>>, vector<1x33xf32>
    %c1 = arith.constant 1 : index
    %3 = memref.load %arg1[%c1] : memref<2xi32, #tpu.memory_space<smem>>
    %4 = arith.index_cast %3 : i32 to index
    %c0_1 = arith.constant 0 : index
    %5 = vector.load %arg2[%4, %c0_1] : memref<100x33xf32, #tpu.memory_space<vmem>>, vector<1x33xf32>
    %6 = tpu.concatenate %2, %5 in 0 : vector<1x33xf32>, vector<1x33xf32> -> vector<2x33xf32>
    %c0_2 = arith.constant 0 : index
    %c0_3 = arith.constant 0 : index
    %7 = vector.load %arg3[%c0_2, %c0_3] : memref<33x384xf32, #tpu.memory_space<vmem>>, vector<33x384xf32>
    %cst = arith.constant dense<0.000000e+00> : vector<2x384xf32>
    %8 = tpu.matmul %6, %7, %cst {dimension_numbers = #tpu.dot_dimension_numbers<[1], [0], [0], [1], [0, 0, 1, 1], [], []>} : vector<2x33xf32>, vector<33x384xf32>, vector<2x384xf32> -> vector<2x384xf32>
    %9 = tpu.iota {dimensions = array<i32: 1>} : vector<1x384xi32>
    %c128_i32 = arith.constant 128 : i32
    %c0_i32 = arith.constant 0 : i32
    %10 = arith.cmpi eq, %c128_i32, %c0_i32 : i32
    %c1_i32 = arith.constant 1 : i32
    %11 = arith.select %10, %c1_i32, %c128_i32 : i32
    %12 = vector.broadcast %11 : i32 to vector<1x384xi32>
    %13 = arith.remsi %9, %12 : vector<1x384xi32>
    %c0_i32_4 = arith.constant 0 : i32
    %14 = vector.broadcast %c0_i32_4 : i32 to vector<1x384xi32>
    %15 = arith.cmpi ne, %13, %14 : vector<1x384xi32>
    %c0_i32_5 = arith.constant 0 : i32
    %16 = vector.broadcast %c0_i32_5 : i32 to vector<1x384xi32>
    %17 = arith.cmpi slt, %13, %16 : vector<1x384xi32>
    %c0_i32_6 = arith.constant 0 : i32
    %18 = arith.cmpi slt, %11, %c0_i32_6 : i32
    %19 = vector.broadcast %18 : i1 to vector<1x384xi1>
    %20 = vector.broadcast %19 : vector<1x384xi1> to vector<1x384xi1>
    %21 = arith.xori %17, %20 : vector<1x384xi1>
    %22 = arith.andi %21, %15 : vector<1x384xi1>
    %23 = vector.broadcast %11 : i32 to vector<1x384xi32>
    %24 = arith.addi %13, %23 : vector<1x384xi32>
    %25 = arith.select %22, %24, %13 : vector<1x384xi1>, vector<1x384xi32>
    %c32_i32 = arith.constant 32 : i32
    %26 = vector.broadcast %c32_i32 : i32 to vector<1x384xi32>
    %27 = arith.cmpi slt, %25, %26 : vector<1x384xi32>
    %28 = vector.extract_strided_slice %8 {offsets = [0, 0], sizes = [1, 384], strides = [1, 1]} : vector<2x384xf32> to vector<1x384xf32>
    %29 = vector.extract_strided_slice %8 {offsets = [1, 0], sizes = [1, 384], strides = [1, 1]} : vector<2x384xf32> to vector<1x384xf32>
    %30 = arith.select %27, %28, %29 : vector<1x384xi1>, vector<1x384xf32>
    %31 = vector.extract_strided_slice %8 {offsets = [1, 0], sizes = [1, 384], strides = [1, 1]} : vector<2x384xf32> to vector<1x384xf32>
    %32 = vector.extract_strided_slice %8 {offsets = [0, 0], sizes = [1, 384], strides = [1, 1]} : vector<2x384xf32> to vector<1x384xf32>
    %33 = arith.select %27, %31, %32 : vector<1x384xi1>, vector<1x384xf32>
    %c0_7 = arith.constant 0 : index
    %c0_8 = arith.constant 0 : index
    %34 = vector.load %arg4[%c0_7, %c0_8] : memref<128x384xf32, #tpu.memory_space<vmem>>, vector<128x384xf32>
    %c0_9 = arith.constant 0 : index
    %c0_10 = arith.constant 0 : index
    %35 = vector.load %arg6[%c0_9, %c0_10] : memref<1x128xf32, #tpu.memory_space<vmem>>, vector<1x128xf32>
    %cst_11 = arith.constant 0.000000e+00 : f32
    %36 = vector.broadcast %cst_11 : f32 to vector<1x128xf32>
    %37 = vector.extract_strided_slice %30 {offsets = [0, 0], sizes = [1, 128], strides = [1, 1]} : vector<1x384xf32> to vector<1x128xf32>
    %38 = arith.negf %37 : vector<1x128xf32>
    %39 = math.exp %38 : vector<1x128xf32>
    %cst_12 = arith.constant 1.000000e+00 : f32
    %40 = vector.broadcast %cst_12 : f32 to vector<1x128xf32>
    %41 = arith.addf %40, %39 : vector<1x128xf32>
    %42 = arith.divf %40, %41 : vector<1x128xf32>
    %43 = vector.extract_strided_slice %30 {offsets = [0, 128], sizes = [1, 128], strides = [1, 1]} : vector<1x384xf32> to vector<1x128xf32>
    %44 = arith.negf %43 : vector<1x128xf32>
    %45 = math.exp %44 : vector<1x128xf32>
    %cst_13 = arith.constant 1.000000e+00 : f32
    %46 = vector.broadcast %cst_13 : f32 to vector<1x128xf32>
    %47 = arith.addf %46, %45 : vector<1x128xf32>
    %48 = arith.divf %46, %47 : vector<1x128xf32>
    %49 = vector.extract_strided_slice %30 {offsets = [0, 256], sizes = [1, 128], strides = [1, 1]} : vector<1x384xf32> to vector<1x128xf32>
    %50 = arith.mulf %42, %35 : vector<1x128xf32>
    %51 = arith.addf %49, %50 : vector<1x128xf32>
    %52 = math.tanh %51 : vector<1x128xf32>
    %cst_14 = arith.constant 1.000000e+00 : f32
    %53 = vector.broadcast %cst_14 : f32 to vector<1x128xf32>
    %54 = arith.subf %53, %48 : vector<1x128xf32>
    %55 = arith.mulf %54, %52 : vector<1x128xf32>
    %56 = arith.mulf %48, %36 : vector<1x128xf32>
    %57 = arith.addf %55, %56 : vector<1x128xf32>
    %cst_15 = arith.constant dense<0.000000e+00> : vector<1x384xf32>
    %58 = tpu.matmul %57, %34, %cst_15 {dimension_numbers = #tpu.dot_dimension_numbers<[1], [0], [0], [1], [0, 0, 1, 1], [], []>} : vector<1x128xf32>, vector<128x384xf32>, vector<1x384xf32> -> vector<1x384xf32>
    %59 = vector.extract_strided_slice %33 {offsets = [0, 0], sizes = [1, 128], strides = [1, 1]} : vector<1x384xf32> to vector<1x128xf32>
    %60 = vector.extract_strided_slice %58 {offsets = [0, 0], sizes = [1, 128], strides = [1, 1]} : vector<1x384xf32> to vector<1x128xf32>
    %61 = arith.addf %59, %60 : vector<1x128xf32>
    %62 = arith.negf %61 : vector<1x128xf32>
    %63 = math.exp %62 : vector<1x128xf32>
    %cst_16 = arith.constant 1.000000e+00 : f32
    %64 = vector.broadcast %cst_16 : f32 to vector<1x128xf32>
    %65 = arith.addf %64, %63 : vector<1x128xf32>
    %66 = arith.divf %64, %65 : vector<1x128xf32>
    %67 = vector.extract_strided_slice %33 {offsets = [0, 128], sizes = [1, 128], strides = [1, 1]} : vector<1x384xf32> to vector<1x128xf32>
    %68 = vector.extract_strided_slice %58 {offsets = [0, 128], sizes = [1, 128], strides = [1, 1]} : vector<1x384xf32> to vector<1x128xf32>
    %69 = arith.addf %67, %68 : vector<1x128xf32>
    %70 = arith.negf %69 : vector<1x128xf32>
    %71 = math.exp %70 : vector<1x128xf32>
    %cst_17 = arith.constant 1.000000e+00 : f32
    %72 = vector.broadcast %cst_17 : f32 to vector<1x128xf32>
    %73 = arith.addf %72, %71 : vector<1x128xf32>
    %74 = arith.divf %72, %73 : vector<1x128xf32>
    %75 = vector.extract_strided_slice %58 {offsets = [0, 256], sizes = [1, 128], strides = [1, 1]} : vector<1x384xf32> to vector<1x128xf32>
    %76 = arith.addf %75, %35 : vector<1x128xf32>
    %77 = vector.extract_strided_slice %33 {offsets = [0, 256], sizes = [1, 128], strides = [1, 1]} : vector<1x384xf32> to vector<1x128xf32>
    %78 = arith.mulf %66, %76 : vector<1x128xf32>
    %79 = arith.addf %77, %78 : vector<1x128xf32>
    %80 = math.tanh %79 : vector<1x128xf32>
    %cst_18 = arith.constant 1.000000e+00 : f32
    %81 = vector.broadcast %cst_18 : f32 to vector<1x128xf32>
    %82 = arith.subf %81, %74 : vector<1x128xf32>
    %83 = arith.mulf %82, %80 : vector<1x128xf32>
    %84 = arith.mulf %74, %57 : vector<1x128xf32>
    %85 = arith.addf %83, %84 : vector<1x128xf32>
    %c0_19 = arith.constant 0 : index
    %c0_20 = arith.constant 0 : index
    %86 = vector.load %arg5[%c0_19, %c0_20] : memref<128x128xf32, #tpu.memory_space<vmem>>, vector<128x128xf32>
    %cst_21 = arith.constant dense<0.000000e+00> : vector<1x128xf32>
    %87 = tpu.matmul %85, %86, %cst_21 {dimension_numbers = #tpu.dot_dimension_numbers<[1], [0], [0], [1], [0, 0, 1, 1], [], []>} : vector<1x128xf32>, vector<128x128xf32>, vector<1x128xf32> -> vector<1x128xf32>
    %c0_22 = arith.constant 0 : index
    %c0_23 = arith.constant 0 : index
    %88 = vector.load %arg7[%c0_22, %c0_23] : memref<1x128xf32, #tpu.memory_space<vmem>>, vector<1x128xf32>
    %89 = arith.addf %87, %88 : vector<1x128xf32>
    %c0_24 = arith.constant 0 : index
    %c0_25 = arith.constant 0 : index
    %90 = vector.load %arg8[%c0_24, %c0_25] : memref<1x128xf32, #tpu.memory_space<vmem>>, vector<1x128xf32>
    tpu.vector_store %arg8[%c0_24, %c0_25], %89 {strides = array<i32>} : memref<1x128xf32, #tpu.memory_space<vmem>>, vector<1x128xf32>,
    return
  }
  func.func @transform_0(%arg0: i32, %arg1: memref<2xi32, #tpu.memory_space<smem>>) -> (i32, i32) {
    %c0_i32 = arith.constant 0 : i32
    %c0_i32_0 = arith.constant 0 : i32
    %c0_i32_1 = arith.constant 0 : i32
    return %c0_i32, %c0_i32_0 : i32, i32
  }
  func.func @transform_1(%arg0: i32, %arg1: memref<2xi32, #tpu.memory_space<smem>>) -> (i32, i32) {
    %c0_i32 = arith.constant 0 : i32
    %c0_i32_0 = arith.constant 0 : i32
    %c0_i32_1 = arith.constant 0 : i32
    return %c0_i32, %c0_i32_0 : i32, i32
  }
  func.func @transform_2(%arg0: i32, %arg1: memref<2xi32, #tpu.memory_space<smem>>) -> (i32, i32) {
    %c0_i32 = arith.constant 0 : i32
    %c0_i32_0 = arith.constant 0 : i32
    %c0_i32_1 = arith.constant 0 : i32
    return %c0_i32, %c0_i32_0 : i32, i32
  }
  func.func @transform_3(%arg0: i32, %arg1: memref<2xi32, #tpu.memory_space<smem>>) -> (i32, i32) {
    %c0_i32 = arith.constant 0 : i32
    %c0_i32_0 = arith.constant 0 : i32
    %c0_i32_1 = arith.constant 0 : i32
    return %c0_i32, %c0_i32_0 : i32, i32
  }
  func.func @transform_4(%arg0: i32, %arg1: memref<2xi32, #tpu.memory_space<smem>>) -> (i32, i32) {
    %c0_i32 = arith.constant 0 : i32
    %c0_i32_0 = arith.constant 0 : i32
    %c0_i32_1 = arith.constant 0 : i32
    return %c0_i32, %c0_i32_0 : i32, i32
  }
  func.func @transform_5(%arg0: i32, %arg1: memref<2xi32, #tpu.memory_space<smem>>) -> (i32, i32) {
    %c0_i32 = arith.constant 0 : i32
    %c0_i32_0 = arith.constant 0 : i32
    %c0_i32_1 = arith.constant 0 : i32
    return %c0_i32, %c0_i32_0 : i32, i32
  }
  func.func @transform_6(%arg0: i32, %arg1: memref<2xi32, #tpu.memory_space<smem>>) -> (i32, i32) {
    %c0_i32 = arith.constant 0 : i32
    %c0_i32_0 = arith.constant 0 : i32
    %c0_i32_1 = arith.constant 0 : i32
    return %c0_i32, %c0_i32_0 : i32, i32
  }
}

</mosaic_0001>

<bundles_post_ra>
// kernel: tpu_custom_call.1
= control target key start
LH: loop header
LB: loop body
LE: loop exit
PB: predicated region body
PF: predicated region fallthrough
CT: control target
= control target key end

     0   :  { %s1093_s0 = inlined_call_operand.vmem [shape: s32[2], index: 0, kind: input, shape index: {}]   ;;  %s1094_s1 = inlined_call_operand.vmem [shape: f32[100,33], index: 1, kind: input, shape index: {}]   ;;  %s1095_s2 = inlined_call_operand.hbm [shape: f32[33,384], index: 2, kind: input, shape index: {}]   ;;  %s1096_s3 = inlined_call_operand.hbm [shape: f32[128,384], index: 3, kind: input, shape index: {}]   ;;  %s1097_s4 = inlined_call_operand.vmem [shape: f32[128,128], index: 4, kind: input, shape index: {}]   ;;  %s1098_s5 = inlined_call_operand.vmem [shape: f32[1,128], index: 5, kind: input, shape index: {}]   ;;  %s1099_s6 = inlined_call_operand.vmem [shape: f32[1,128], index: 6, kind: input, shape index: {}]   ;;  %s1100_s7 = inlined_call_operand.hbm [shape: f32[1,128], index: 7, kind: output, shape index: {}]  }
   0x1   :  { %s12_s26 = sshll.u32 %s1093_s0, 4  ;;  %s13_s26 = int_to_ptr.vmem [resolvable:$true] %s12_s26 }
   0x2   :  { %s816_s27 = scalar_lea.vmem %s13_s26, 16  ;;  %p821_p1 = scmp.lt.s32.totalorder %s13_s26, %s13_s26 }
   0x3   :  { %p817_p0 = scmp.ne.s32.totalorder %s13_s26, %s816_s27  ;;  %p822_p2 = scmp.lt.s32.totalorder %s816_s27, %s816_s27 }
   0x5   :  { %p823_p3 = por %p822_p2, %p821_p1 }
   0x7   :  { %p824_p4 = pnand %p823_p3, %p817_p0 }
   0x9   :  { %827 = shalt.err (!%p824_p4)  }
   0xa   :  { %s896_s28 = smov [#allocation3]  }
   0xb   :  { %15 = dma.vmem_to_smem %s13_s26, 16, %s896_s28, [#allocation2] }
   0xc   :  { %888 = dma.done.wait [#allocation2], 16 }
   0xd   :  { %889 = vsyncadd [#allocation2], 4294967280 }
   0xe   :  { %17 = sfence }
   0xf   :  { %18 = vsyncpa [#allocation5], 0 }
  0x10   :  { %19 = vsyncpa [#allocation8], 0 }
  0x11   :  { %20 = vsyncpa [#allocation6], 0  ;;  %s897_s29 = smov [#allocation4]  }
  0x12   :  { %s28_s30 = sshll.u32 %s897_s29, 4  ;;  %s29_s30 = int_to_ptr.vmem [resolvable:$true] %s28_s30 }
  0x13   :  { %s836_s0 = scalar_lea.vmem %s29_s30, 1920  ;;  %p841_p6 = scmp.lt.s32.totalorder %s29_s30, %s29_s30 }
  0x14   :  { %p837_p5 = scmp.ne.s32.totalorder %s29_s30, %s836_s0  ;;  %p842_p7 = scmp.lt.s32.totalorder %s836_s0, %s836_s0 }
  0x16   :  { %p843_p8 = por %p842_p7, %p841_p6 }
  0x18   :  { %p844_p9 = pnand %p843_p8, %p837_p5 }
  0x1a   :  { %847 = shalt.err (!%p844_p9)
}
  0x1b   :  { %s898_s8 = smov 384   ;;  %s899_s9 = smov 24  }
  0x1c   :  { %34 = dma.hbm_to_vmem [thread:$0]  %s1095_s2, 1920, %s29_s30, [#allocation5], %s898_s8, %s898_s8, %s899_s9  }
  0x1d   :  { %s900_s12 = smov [#allocation7]  }
  0x1e   :  { %s40_s13 = sshll.u32 %s900_s12, 4  ;;  %s41_s13 = int_to_ptr.vmem [resolvable:$true] %s40_s13 }
  0x1f   :  { %s856_s14 = scalar_lea.vmem %s41_s13, 6144  ;;  %p861_p11 = scmp.lt.s32.totalorder %s41_s13, %s41_s13 }
  0x20   :  { %p857_p10 = scmp.ne.s32.totalorder %s41_s13, %s856_s14  ;;  %p862_p12 = scmp.lt.s32.totalorder %s856_s14, %s856_s14 }
  0x22   :  { %p863_p13 = por %p862_p12, %p861_p11 }
  0x24   :  { %p864_p0 = pnand %p863_p13, %p857_p10 }
  0x26   :  { %867 = shalt.err (!%p864_p0)
}
  0x27   :  { %46 = dma.hbm_to_vmem [thread:$0]  %s1096_s3, 6144, %s41_s13, [#allocation8], %s898_s8, %s898_s8, %s899_s9  }
  0x28   :  { %890 = dma.done.wait [#allocation5], 1920  }
  0x29   :  { %891 = vsyncadd [#allocation5], 4294965376 }
  0x2a   :  { %892 = dma.done.wait [#allocation8], 6144  }
  0x2b   :  { %893 = vsyncadd [#allocation8], 4294961152  ;;  %v901_v0 = vmov 0.0   ;;  %s59_s2 = sld [smem:[#allocation3]]  ;;  %vm68_vm0 = vcmask 1040384   ;;  %v80_v3 = vld [vmem:[#allocation4 + $0x50] sm:$0xff] }
  0x2c   :  { %162 = vmatprep.mubr.f32.mxu1 %v901_v0  ;;  %435 = vmatprep.mubr.f32.mxu0 %v901_v0  ;;  %s655_s17 = sld [smem:[#allocation3 + $0x1]]  ;;  %v83_v1 = vld [vmem:[#allocation4 + $0x68] sm:$0x1]  ;;  %v82_v2 = vld [vmem:[#allocation4 + $0x60] sm:$0x1]  ;;  %v77_v5 = vld [vmem:[#allocation4 + $0x38] sm:$0xff] }
  0x2d   :  { %656 = vmatprep.subr.msk.mxu1 %vm68_vm0, %v83_v1  ;;  %v79_v4 = vld [vmem:[#allocation4 + $0x48] sm:$0xff]  ;;  %v76_v6 = vld [vmem:[#allocation4 + $0x30] sm:$0xff]  ;;  %v74_v8 = vld [vmem:[#allocation4 + $0x20] sm:$0xff]  ;;  %vm85_vm1 = vcmask 269312   ;;  %vm902_vm2 = vmmov 0   ;;  %s903_s28 = smov [#allocation9]  }
  0x2e   :  { %657 = vmatpush1.msk.msra.mxu1 %vm68_vm0, %v82_v2  ;;  %v73_v10 = vld [vmem:[#allocation4 + $0x18] sm:$0xff]  ;;  %v71_v12 = vld [vmem:[#allocation4 + $0x8] sm:$0xff]  ;;  %v70_v13 = vld [vmem:[#allocation4] sm:$0xff]  ;;  %s643_s29 = sshll.u32 %s903_s28, 4  ;;  %s644_s29 = int_to_ptr.vmem [resolvable:$true] %s643_s29 }
  0x2f   :  { %122 = vmatprep.subr.mxu1 %v80_v3  ;;  %v84_v15 = vld [vmem:[#allocation4 + $0x70] sm:$0x1]  ;;  %v81_v16 = vld [vmem:[#allocation4 + $0x58] sm:$0xff]  ;;  %v78_v17 = vld [vmem:[#allocation4 + $0x40] sm:$0xff]  ;;  %s868_s30 = scalar_lea.vmem %s644_s29, 16  ;;  %s872_s0 = scalar_lea.vmem %s644_s29, 32 }
  0x30   :  { %123 = vmatpush1.msra.mxu1 %v79_v4  ;;  %v75_v18 = vld [vmem:[#allocation4 + $0x28] sm:$0xff]  ;;  %v72_v19 = vld [vmem:[#allocation4 + $0x10] sm:$0xff]  ;;  %v348_v21 = vld [vmem:[#allocation7 + $0x168] sm:$0xff]  ;;  %p869_p1 = scmp.ne.s32.totalorder %s644_s29, %s868_s30  ;;  %p873_p2 = scmp.lt.s32.totalorder %s644_s29, %s644_s29 }
  0x31   :  { %s60_s22 = scalar_lea.vmem %s1094_s1, %s59_s2  ;;  %124 = vmatprep.subr.mxu1 %v77_v5  ;;  %v349_v20 = vld [vmem:[#allocation7 + $0x170] sm:$0xff]  ;;  %v350_v22 = vld [vmem:[#allocation7 + $0x178] sm:$0xff]  ;;  %v347_v25 = vld [vmem:[#allocation7 + $0x160] sm:$0xff]  ;;  %v239_v5 = vlaneseq  ;;  %p874_p3 = scmp.lt.s32.totalorder %s872_s0, %s868_s30 }
  0x32   :  { %s63_s19 = scalar_lea.vmem %s1094_s1, %s655_s17  ;;  %v61_v11 = vld [vmem:[%s60_s22] sm:$0x1]  ;;  %125 = vmatpush1.msra.mxu1 %v76_v6  ;;  %371 = vmatprep.subr.mxu0 %v349_v20  ;;  %v346_v23 = vld [vmem:[#allocation7 + $0x158] sm:$0xff]  ;;  %v345_v24 = vld [vmem:[#allocation7 + $0x150] sm:$0xff] }
  0x33   :  { %v64_v7 = vld [vmem:[%s63_s19] sm:$0x1]  ;;  %126 = vmatprep.subr.mxu1 %v74_v8  ;;  %372 = vmatpush1.msra.mxu0 %v348_v21  ;;  %v343_v26 = vld [vmem:[#allocation7 + $0x140] sm:$0xff]  ;;  %v342_v28 = vld [vmem:[#allocation7 + $0x138] sm:$0xff]  ;;  %v240_v6 = vand.u32 127, %v239_v5  ;;  %p875_p4 = por %p874_p3, %p873_p2 }
  0x34   :  { %v66_v9 = vrot.slane %v64_v7, 7  ;;  %127 = vmatpush1.msra.mxu1 %v73_v10  ;;  %v344_v27 = vld [vmem:[#allocation7 + $0x148] sm:$0xff]  ;;  %373 = vmatprep.subr.mxu0 %v346_v23  ;;  %v339_v30 = vld [vmem:[#allocation7 + $0x120] sm:$0xff]  ;;  %v341_v31 = vld [vmem:[#allocation7 + $0x130] sm:$0xff] }
  0x35   :  { %128 = vmatprep.subr.mxu1 %v71_v12  ;;  %374 = vmatpush1.msra.mxu0 %v345_v24  ;;  %v340_v29 = vld [vmem:[#allocation7 + $0x128] sm:$0xff]  ;;  %v337_v32 = vld [vmem:[#allocation7 + $0x110] sm:$0xff]  ;;  %v338_v34 = vld [vmem:[#allocation7 + $0x118] sm:$0xff]  ;;  %v241_v7 = vadd.s32 128, %v240_v6  ;;  %vm279_vm3 = vcmp.lt.s32.totalorder %v240_v6, 32  ;;  %p876_p5 = pnand %p875_p4, %p869_p1 }
  0x36   :  { %v69_v14 = vsel %vm68_vm0, %v61_v11, %v66_v9  ;;  %129 = vmatpush1.msra.mxu1 %v70_v13  ;;  %375 = vmatprep.subr.mxu0 %v343_v26  ;;  %v336_v33 = vld [vmem:[#allocation7 + $0x108] sm:$0xff]  ;;  %v334_v35 = vld [vmem:[#allocation7 + $0xf8] sm:$0xff]  ;;  %v333_v36 = vld [vmem:[#allocation7 + $0xf0] sm:$0xff]  ;;  %v242_v13 = vadd.s32 256, %v240_v6 }
  0x37   :  { %658 = vmatmul.mubr.msk.f32.vlgmr.msra.gmra.mxu1 %vm85_vm1, %v69_v14  ;;  %705 = vmatprep.subr.mxu1 %v901_v0  ;;  %v335_v37 = vld [vmem:[#allocation7 + $0x100] sm:$0xff]  ;;  %v330_v39 = vld [vmem:[#allocation7 + $0xd8] sm:$0xff]  ;;  %v332_v40 = vld [vmem:[#allocation7 + $0xe8] sm:$0xff]  ;;  %v254_v8 = vand.u32 127, %v241_v7 }
  0x38   :  { %706 = vmatpush3.msk.msra.mxu1 %vm68_vm0, %v84_v15  ;;  %715 = vmatprep.mubr.msk.f32.mxu1 %vm902_vm2, %v901_v0  ;;  %v331_v38 = vld [vmem:[#allocation7 + $0xe0] sm:$0xff]  ;;  %v328_v41 = vld [vmem:[#allocation7 + $0xc8] sm:$0xff]  ;;  %v329_v43 = vld [vmem:[#allocation7 + $0xd0] sm:$0xff]  ;;  %v261_v20 = vand.u32 127, %v242_v13 }
  0x39   :  { %707 = vmatprep.subr.mxu1 %v901_v0  ;;  %376 = vmatpush1.msra.mxu0 %v342_v28  ;;  %v327_v42 = vld [vmem:[#allocation7 + $0xc0] sm:$0xff]  ;;  %v325_v44 = vld [vmem:[#allocation7 + $0xb0] sm:$0xff]  ;;  %v324_v45 = vld [vmem:[#allocation7 + $0xa8] sm:$0xff]  ;;  %vm280_vm4 = vcmp.lt.s32.totalorder %v254_v8, 32 }
  0x3a   :  { %708 = vmatpush3.msra.mxu1 %v81_v16  ;;  %377 = vmatprep.subr.mxu0 %v340_v29  ;;  %v326_v46 = vld [vmem:[#allocation7 + $0xb8] sm:$0xff]  ;;  %v321_v48 = vld [vmem:[#allocation7 + $0x90] sm:$0xff]  ;;  %v323_v49 = vld [vmem:[#allocation7 + $0xa0] sm:$0xff]  ;;  %vm997_vm5 = vcmp.lt.s32.totalorder %v261_v20, 32 }
  0x3b   :  { %709 = vmatprep.subr.mxu1 %v901_v0  ;;  %378 = vmatpush1.msra.mxu0 %v339_v30  ;;  %v322_v47 = vld [vmem:[#allocation7 + $0x98] sm:$0xff]  ;;  %v319_v50 = vld [vmem:[#allocation7 + $0x80] sm:$0xff]  ;;  %v320_v52 = vld [vmem:[#allocation7 + $0x88] sm:$0xff] }
  0x3c   :  { %710 = vmatpush3.msra.mxu1 %v78_v17  ;;  %379 = vmatprep.subr.mxu0 %v337_v32  ;;  %v318_v51 = vld [vmem:[#allocation7 + $0x78] sm:$0xff]  ;;  %v316_v53 = vld [vmem:[#allocation7 + $0x68] sm:$0xff]  ;;  %v315_v54 = vld [vmem:[#allocation7 + $0x60] sm:$0xff] }
  0x3d   :  { %711 = vmatprep.subr.mxu1 %v901_v0  ;;  %380 = vmatpush1.msra.mxu0 %v336_v33  ;;  %v317_v55 = vld [vmem:[#allocation7 + $0x70] sm:$0xff]  ;;  %v312_v57 = vld [vmem:[#allocation7 + $0x48] sm:$0xff]  ;;  %v314_v58 = vld [vmem:[#allocation7 + $0x58] sm:$0xff] }
  0x3e   :  { %712 = vmatpush3.msra.mxu1 %v75_v18  ;;  %381 = vmatprep.subr.mxu0 %v334_v35  ;;  %v313_v56 = vld [vmem:[#allocation7 + $0x50] sm:$0xff]  ;;  %v310_v59 = vld [vmem:[#allocation7 + $0x38] sm:$0xff]  ;;  %v311_v61 = vld [vmem:[#allocation7 + $0x40] sm:$0xff] }
  0x3f   :  { %713 = vmatprep.subr.mxu1 %v901_v0  ;;  %382 = vmatpush1.msra.mxu0 %v333_v36  ;;  %v309_v60 = vld [vmem:[#allocation7 + $0x30] sm:$0xff]  ;;  %v307_v62 = vld [vmem:[#allocation7 + $0x20] sm:$0xff]  ;;  %v306_v63 = vld [vmem:[#allocation7 + $0x18] sm:$0xff] }
  0x40   :  { %714 = vmatpush3.msra.mxu1 %v72_v19  ;;  %383 = vmatprep.subr.mxu0 %v331_v38  ;;  %v308_v1 = vld [vmem:[#allocation7 + $0x28] sm:$0xff]  ;;  %v303_v3 = vld [vmem:[#allocation7] sm:$0xff]  ;;  %v305_v4 = vld [vmem:[#allocation7 + $0x10] sm:$0xff] }
  0x41   :  { %716 = vmatmul.mubr.msk.f32.vlgmr.msra.gmra.mxu1 %vm85_vm1, %v69_v14  ;;  %718 = vmatprep.subr.mxu1 %v901_v0  ;;  %v304_v2 = vld [vmem:[#allocation7 + $0x8] sm:$0xff] }
  0x42   :  { %750 = vmatprep.mubr.msk.f32.mxu1 %vm902_vm2, %v901_v0  ;;  %719 = vmatpush3.msra.mxu1 %v350_v22  ;;  %v1008_v33 = vld [vmem:[%s1098_s5] sm:$0x1] }
  0x43   :  { %720 = vmatprep.subr.mxu1 %v901_v0  ;;  %384 = vmatpush1.msra.mxu0 %v330_v39  ;;  %v562_v23 = vld [vmem:[%s1099_s6] sm:$0x1] }
  0x44   :  { %721 = vmatpush3.msra.mxu1 %v347_v25  ;;  %385 = vmatprep.subr.mxu0 %v328_v41 }
  0x45   :  { %722 = vmatprep.subr.mxu1 %v901_v0  ;;  %386 = vmatpush1.msra.mxu0 %v327_v42 }
  0x46   :  { %723 = vmatpush3.msra.mxu1 %v344_v27  ;;  %387 = vmatprep.subr.mxu0 %v325_v44  ;;  %v561_v44 = vld [vmem:[%s1097_s4 + $0x78] sm:$0xff] }
  0x47   :  { %724 = vmatprep.subr.mxu1 %v901_v0  ;;  %388 = vmatpush1.msra.mxu0 %v324_v45  ;;  %v560_v45 = vld [vmem:[%s1097_s4 + $0x70] sm:$0xff] }
  0x48   :  { %725 = vmatpush3.msra.mxu1 %v341_v31  ;;  %389 = vmatprep.subr.mxu0 %v322_v47  ;;  %v558_v47 = vld [vmem:[%s1097_s4 + $0x60] sm:$0xff] }
  0x49   :  { %726 = vmatprep.subr.mxu1 %v901_v0  ;;  %390 = vmatpush1.msra.mxu0 %v321_v48  ;;  %v557_v48 = vld [vmem:[%s1097_s4 + $0x58] sm:$0xff] }
  0x4a   :  { %727 = vmatpush3.msra.mxu1 %v338_v34  ;;  %391 = vmatprep.subr.mxu0 %v319_v50  ;;  %v555_v50 = vld [vmem:[%s1097_s4 + $0x48] sm:$0xff] }
  0x4b   :  { %728 = vmatprep.subr.mxu1 %v901_v0  ;;  %392 = vmatpush1.msra.mxu0 %v318_v51  ;;  %v554_v51 = vld [vmem:[%s1097_s4 + $0x40] sm:$0xff] }
  0x4c   :  { %729 = vmatpush3.msra.mxu1 %v335_v37  ;;  %393 = vmatprep.subr.mxu0 %v316_v53  ;;  %v552_v53 = vld [vmem:[%s1097_s4 + $0x30] sm:$0xff] }
  0x4d   :  { %730 = vmatprep.subr.mxu1 %v901_v0  ;;  %394 = vmatpush1.msra.mxu0 %v315_v54  ;;  %v551_v54 = vld [vmem:[%s1097_s4 + $0x28] sm:$0xff] }
  0x4e   :  { %731 = vmatpush3.msra.mxu1 %v332_v40  ;;  %395 = vmatprep.subr.mxu0 %v313_v56  ;;  %v549_v56 = vld [vmem:[%s1097_s4 + $0x18] sm:$0xff] }
  0x4f   :  { %732 = vmatprep.subr.mxu1 %v901_v0  ;;  %396 = vmatpush1.msra.mxu0 %v312_v57  ;;  %v548_v57 = vld [vmem:[%s1097_s4 + $0x10] sm:$0xff] }
  0x50   :  { %733 = vmatpush3.msra.mxu1 %v329_v43  ;;  %397 = vmatprep.subr.mxu0 %v310_v59  ;;  %v546_v59 = vld [vmem:[%s1097_s4] sm:$0xff] }
  0x51   :  { %734 = vmatprep.subr.mxu1 %v901_v0  ;;  %398 = vmatpush1.msra.mxu0 %v309_v60 }
  0x52   :  { %735 = vmatpush3.msra.mxu1 %v326_v46  ;;  %399 = vmatprep.subr.mxu0 %v307_v62  ;;  %v559_v46 = vld [vmem:[%s1097_s4 + $0x68] sm:$0xff] }
  0x53   :  { %736 = vmatprep.subr.mxu1 %v901_v0  ;;  %400 = vmatpush1.msra.mxu0 %v306_v63 }
  0x54   :  { %737 = vmatpush3.msra.mxu1 %v323_v49  ;;  %401 = vmatprep.subr.mxu0 %v304_v2  ;;  %v556_v49 = vld [vmem:[%s1097_s4 + $0x50] sm:$0xff] }
  0x55   :  { %738 = vmatprep.subr.mxu1 %v901_v0  ;;  %402 = vmatpush1.msra.mxu0 %v303_v3 }
  0x56   :  { %739 = vmatpush3.msra.mxu1 %v320_v52  ;;  %753 = vmatprep.subr.mxu0 %v901_v0  ;;  %v553_v52 = vld [vmem:[%s1097_s4 + $0x38] sm:$0xff] }
  0x57   :  { %740 = vmatprep.subr.mxu1 %v901_v0 }
  0x58   :  { %741 = vmatpush3.msra.mxu1 %v317_v55  ;;  %v550_v55 = vld [vmem:[%s1097_s4 + $0x20] sm:$0xff] }
  0x59   :  { %742 = vmatprep.subr.mxu1 %v901_v0 }
  0x5a   :  { %743 = vmatpush3.msra.mxu1 %v314_v58  ;;  %v547_v58 = vld [vmem:[%s1097_s4 + $0x8] sm:$0xff] }
  0x5b   :  { %744 = vmatprep.subr.mxu1 %v901_v0 }
  0x5c   :  { %745 = vmatpush3.msra.mxu1 %v311_v61 }
  0x5d   :  { %746 = vmatprep.subr.mxu1 %v901_v0 }
  0x5e   :  { %747 = vmatpush3.msra.mxu1 %v308_v1 }
  0x5f   :  { %748 = vmatprep.subr.mxu1 %v901_v0 }
  0x60   :  { %749 = vmatpush3.msra.mxu1 %v305_v4 }
  0xf7   :  { %v164_v9 = vpop.f32.mrf.mxu1 }
  0xf8   :  { %v285_v10 = vrot.slane %v164_v9, 1  ;;  %v294_v11 = vrot.slane %v164_v9, 7 }
  0xf9   :  { %v166_v12 = vpop.f32.mrf.mxu1 }
  0xfa   :  { %v291_v14 = vsel %vm279_vm3, %v164_v9, %v285_v10  ;;  %v295_v15 = vrot.slane %v166_v12, 7  ;;  %v993_v16 = vsel %vm279_vm3, %v164_v9, %v294_v11  ;;  %v286_v18 = vrot.slane %v166_v12, 1 }
  0xfb   :  { %v661_v17 = vmul.f32 -1.442695, %v291_v14 }
  0xfc   :  { %v995_v19 = vsel %vm280_vm4, %v166_v12, %v295_v15  ;;  %v292_v21 = vsel %vm280_vm4, %v166_v12, %v286_v18 }
  0xfd   :  { %796 = vpow2.f32 %v661_v17  ;;  %v662_v25 = vmul.f32 -1.442695, %v292_v21 }
  0xff   :  { %798 = vpow2.f32 %v662_v25 }
 0x101   :  { %v235_v22 = vpop.f32.mrf.mxu1 }
 0x102   :  { %v296_v24 = vrot.slane %v235_v22, 7  ;;  %v287_v32 = vrot.slane %v235_v22, 1 }
 0x103   :  { %v717_v26 = vpop.f32.mrf.mxu1 }
 0x104   :  { %v1003_v27 = vsel %vm997_vm5, %v235_v22, %v296_v24  ;;  %v293_v36 = vsel %vm997_vm5, %v235_v22, %v287_v32 }
 0x10a   :  { %v797_v28 = vpop.eup %796 }
 0x10b   :  { %v355_v29 = vadd.f32 1.0, %v797_v28 }
 0x10c   :  { %v799_v30 = vpop.eup %798 }
 0x10d   :  { %800 = vrcp.f32 %v355_v29  ;;  %v361_v31 = vadd.f32 1.0, %v799_v30 }
 0x10f   :  { %802 = vrcp.f32 %v361_v31 }
 0x11a   :  { %v801_v34 = vpop.eup %800 }
 0x11b   :  { %v364_v35 = vmul.f32 %v801_v34, %v1008_v33 }
 0x11c   :  { %v803_v38 = vpop.eup %802 }
 0x11d   :  { %v365_v37 = vadd.f32 %v364_v35, %v293_v36  ;;  %v367_v39 = vsub.f32 1.0, %v803_v38  ;;  %v369_v42 = vmul.f32 0.0, %v803_v38 }
 0x11f   :  { %804 = vtanh.f32 %v365_v37 }
 0x12c   :  { %v805_v40 = vpop.eup %804 }
 0x12d   :  { %v368_v41 = vmul.f32 %v805_v40, %v367_v39 }
 0x12f   :  { %v1013_v43 = vadd.f32 %v369_v42, %v368_v41 }
 0x131   :  { %436 = vmatmul.mubr.f32.vlgmr.msra.gmra.mxu0 %v1013_v43  ;;  %751 = vmatmul.mubr.f32.vlgmr.msra.gmra.mxu1 %v1013_v43  ;;  %v542_v13 = vrot.slane %v1013_v43, 7 }
 0x132   :  { %785 = vmatprep.mubr.msk.f32.mxu0 %vm902_vm2, %v901_v0  ;;  %754 = vmatpush3.msra.mxu0 %v561_v44 }
 0x133   :  { %755 = vmatprep.subr.mxu0 %v901_v0 }
 0x134   :  { %756 = vmatpush3.msra.mxu0 %v560_v45 }
 0x135   :  { %757 = vmatprep.subr.mxu0 %v901_v0 }
 0x136   :  { %758 = vmatpush3.msra.mxu0 %v559_v46 }
 0x137   :  { %759 = vmatprep.subr.mxu0 %v901_v0 }
 0x138   :  { %760 = vmatpush3.msra.mxu0 %v558_v47 }
 0x139   :  { %761 = vmatprep.subr.mxu0 %v901_v0 }
 0x13a   :  { %762 = vmatpush3.msra.mxu0 %v557_v48 }
 0x13b   :  { %763 = vmatprep.subr.mxu0 %v901_v0 }
 0x13c   :  { %764 = vmatpush3.msra.mxu0 %v556_v49 }
 0x13d   :  { %765 = vmatprep.subr.mxu0 %v901_v0 }
 0x13e   :  { %766 = vmatpush3.msra.mxu0 %v555_v50 }
 0x13f   :  { %767 = vmatprep.subr.mxu0 %v901_v0 }
 0x140   :  { %768 = vmatpush3.msra.mxu0 %v554_v51 }
 0x141   :  { %769 = vmatprep.subr.mxu0 %v901_v0 }
 0x142   :  { %770 = vmatpush3.msra.mxu0 %v553_v52 }
 0x143   :  { %771 = vmatprep.subr.mxu0 %v901_v0 }
 0x144   :  { %772 = vmatpush3.msra.mxu0 %v552_v53 }
 0x145   :  { %773 = vmatprep.subr.mxu0 %v901_v0 }
 0x146   :  { %774 = vmatpush3.msra.mxu0 %v551_v54 }
 0x147   :  { %775 = vmatprep.subr.mxu0 %v901_v0 }
 0x148   :  { %776 = vmatpush3.msra.mxu0 %v550_v55 }
 0x149   :  { %777 = vmatprep.subr.mxu0 %v901_v0 }
 0x14a   :  { %778 = vmatpush3.msra.mxu0 %v549_v56 }
 0x14b   :  { %779 = vmatprep.subr.mxu0 %v901_v0 }
 0x14c   :  { %780 = vmatpush3.msra.mxu0 %v548_v57 }
 0x14d   :  { %781 = vmatprep.subr.mxu0 %v901_v0 }
 0x14e   :  { %782 = vmatpush3.msra.mxu0 %v547_v58 }
 0x14f   :  { %783 = vmatprep.subr.mxu0 %v901_v0 }
 0x150   :  { %784 = vmatpush3.msra.mxu0 %v546_v59 }
 0x1f1   :  { %v437_v60 = vpop.f32.mrf.mxu0  ;;  %v508_v61 = vpop.f32.mrf.mxu1 }
 0x1f2   :  { %v513_v62 = vrot.slane %v437_v60, 7  ;;  %v532_v10 = vadd.f32 %v508_v61, %v1008_v33 }
 0x1f3   :  { %v439_v63 = vpop.f32.mrf.mxu0  ;;  %v752_v1 = vpop.f32.mrf.mxu1 }
 0x1f4   :  { %v515_v2 = vadd.f32 %v513_v62, %v993_v16  ;;  %v523_v3 = vrot.slane %v439_v63, 7  ;;  %v534_v11 = vrot.slane %v532_v10, 7 }
 0x1f6   :  { %v663_v4 = vmul.f32 -1.442695, %v515_v2  ;;  %v525_v5 = vadd.f32 %v523_v3, %v995_v19 }
 0x1f8   :  { %806 = vpow2.f32 %v663_v4  ;;  %v664_v6 = vmul.f32 -1.442695, %v525_v5 }
 0x1fa   :  { %808 = vpow2.f32 %v664_v6 }
 0x205   :  { %v807_v7 = vpop.eup %806 }
 0x206   :  { %v519_v8 = vadd.f32 1.0, %v807_v7 }
 0x207   :  { %v809_v9 = vpop.eup %808 }
 0x208   :  { %810 = vrcp.f32 %v519_v8  ;;  %v529_v0 = vadd.f32 1.0, %v809_v9 }
 0x20a   :  { %812 = vrcp.f32 %v529_v0 }
 0x215   :  { %v811_v12 = vpop.eup %810 }
 0x216   :  { %v536_v14 = vmul.f32 %v811_v12, %v534_v11 }
 0x217   :  { %v813_v15 = vpop.eup %812 }
 0x218   :  { %v537_v16 = vadd.f32 %v536_v14, %v1003_v27  ;;  %v544_v17 = vmul.f32 %v813_v15, %v542_v13  ;;  %v539_v18 = vsub.f32 1.0, %v813_v15 }
 0x21a   :  { %814 = vtanh.f32 %v537_v16 }
 0x227   :  { %v815_v19 = vpop.eup %814 }
 0x228   :  { %v540_v20 = vmul.f32 %v815_v19, %v539_v18 }
 0x22a   :  { %v545_v21 = vadd.f32 %v544_v17, %v540_v20 }
 0x22c   :  { %v564_v22 = vrot.slane %v545_v21, 1 }
 0x22e   :  { %786 = vmatmul.mubr.f32.vlgmr.msra.gmra.mxu0 %v564_v22 }
 0x2ee   :  { %v632_v24 = vpop.f32.mrf.mxu0 }
 0x2ef   :  { %v633_v25 = vadd.f32 %v632_v24, %v562_v23 }
 0x2f0   :  { %v787_v26 = vpop.f32.mrf.mxu0 }
 0x2f1   :  { %636 = vst [vmem:[#allocation9] sm:$0x1] %v633_v25 }
 0x2f2   :  { %879 = shalt.err (!%p876_p5)
}
 0x2f3   :  { %646 = dma.vmem_to_hbm [thread:$0]  %s644_s29, 16, %s1100_s7, [#allocation6]  }
 0x2f4   :  { %894 = dma.done.wait [#allocation6], 16  }
 0x2f5   :  { %895 = vsyncadd [#allocation6], 4294967280 }
 0x2f6   :  { %650 = vsyncpa [#allocation5], 1 }
 0x2f7   :  { %651 = vsyncpa [#allocation8], 1 }
 0x2f8   :  { %652 = vsyncpa [#allocation6], 1 }

</bundles_post_ra>
